<compile_context>
chip_gen: v7x
topology: tpu7x:2x2x1
jax: 0.10.0
libtpu: 0.0.40
codegen_flags: <defaults>
</compile_context>

<pallas_src>
import jax
import jax.numpy as jnp
from jax.experimental import pallas as pl
from jax.experimental.pallas import tpu as pltpu


def _sigmoid_kernel(x_ref, o_ref):
    # sigmoid(x) = 0.5 * tanh(0.5 * x) + 0.5  -> single EUP op per element,
    # mul/add on the VALU. Upcast to f32 in-register; store in input dtype.
    x = x_ref[...].astype(jnp.float32)
    o_ref[...] = (0.5 * jnp.tanh(0.5 * x) + 0.5).astype(o_ref.dtype)


def _sigmoid_pallas_2d(x2d, *, target_block_bytes, vmem_limit_bytes):
    """Run the sigmoid kernel over a 2-D array, tiling rows into lane-dense blocks."""
    rows, cols = x2d.shape
    dtype = x2d.dtype
    itemsize = jnp.dtype(dtype).itemsize
    # Packed sublane-tile row granularity: 8 rows f32, 16 bf16/f16, 32 int8/fp8.
    sub = max(8, 32 // max(1, itemsize))
    total_bytes = rows * cols * itemsize
    n = rows * cols

    if cols % 128 != 0:
        # Tiny / ragged tail: one block equal to the full array dims (waives
        # the (8,128) divisibility constraint).
        block_rows = rows
        grid = 1
    else:
        # Largest sub-aligned block that stays near target_block_bytes.
        cap_rows = max(sub, (target_block_bytes // (cols * itemsize)) // sub * sub)
        if total_bytes >= 2 * 1024 * 1024:
            # Guarantee >= 2 grid steps for multi-MiB inputs so v7x's two
            # TensorCores both stream (the axis is marked "parallel").
            half_rows = pl.cdiv(pl.cdiv(rows, 2), sub) * sub
            cap_rows = min(cap_rows, half_rows)
        block_rows = min(cap_rows, rows)   # == rows (full dim) for small inputs
        grid = pl.cdiv(rows, block_rows)   # last block may be partial: Pallas
                                           # pads the read / masks the write.

    cost = pl.CostEstimate(
        flops=4 * n,            # mul + add (+ cast) per element
        transcendentals=n,      # one tanh per element
        bytes_accessed=2 * n * itemsize,
    )

    return pl.pallas_call(
        _sigmoid_kernel,
        out_shape=jax.ShapeDtypeStruct((rows, cols), dtype),
        grid_spec=pltpu.PrefetchScalarGridSpec(
            num_scalar_prefetch=0,
            grid=(grid,),
            in_specs=[pl.BlockSpec((block_rows, cols), lambda i: (i, 0))],
            out_specs=pl.BlockSpec((block_rows, cols), lambda i: (i, 0)),
        ),
        compiler_params=pltpu.CompilerParams(
            dimension_semantics=("parallel",),
            vmem_limit_bytes=vmem_limit_bytes,
        ),
        cost_estimate=cost,
    )(x2d)


def my_sigmoid(x, *, target_block_bytes=4 * 1024 * 1024,
               vmem_limit_bytes=48 * 1024 * 1024):
    """Elementwise sigmoid via Pallas TPU kernels. Accepts any shape/dtype."""
    orig_shape = x.shape
    if not jnp.issubdtype(x.dtype, jnp.floating):
        # torch.sigmoid promotes integer inputs to floating point.
        x = x.astype(jnp.float32)
    n = x.size
    if n == 0:
        return jnp.reshape(x, orig_shape)

    x_flat = jnp.reshape(x, (-1,))  # layout-preserving flatten (no HBM copy)
    kw = dict(target_block_bytes=target_block_bytes,
              vmem_limit_bytes=vmem_limit_bytes)

    # Prefer a lane width that divides n exactly -> zero-copy reshape, no pad,
    # no output slice. The last *grid* block may still be partial; Pallas
    # handles that with masked writes.
    lanes = next((c for c in (512, 256, 128) if n % c == 0), None)
    if lanes is not None:
        out2d = _sigmoid_pallas_2d(jnp.reshape(x_flat, (n // lanes, lanes)), **kw)
        return jnp.reshape(out2d, orig_shape)

    # Ragged size: stream the bulk through the tiled kernel and handle the
    # <512-element tail with a tiny single-block pallas_call (no whole-array
    # jnp.pad round trip).
    lanes = 512
    bulk = (n // lanes) * lanes
    pieces = []
    if bulk:
        y_bulk = _sigmoid_pallas_2d(
            jnp.reshape(x_flat[:bulk], (bulk // lanes, lanes)), **kw)
        pieces.append(jnp.reshape(y_bulk, (-1,)))
    tail = n - bulk
    y_tail = _sigmoid_pallas_2d(jnp.reshape(x_flat[bulk:], (1, tail)), **kw)
    pieces.append(jnp.reshape(y_tail, (-1,)))
    out_flat = pieces[0] if len(pieces) == 1 else jnp.concatenate(pieces)
    return jnp.reshape(out_flat, orig_shape)


if __name__ == "__main__":
    key = jax.random.PRNGKey(0)

    # Small NCHW input consistent with a conv-style pipeline: batch=2, ch=4, 16x16.
    x = jax.random.normal(key, (2, 4, 16, 16), dtype=jnp.float32)
    y = jax.block_until_ready(my_sigmoid(x))
    ref = jax.nn.sigmoid(x)
    assert y.shape == x.shape and y.dtype == x.dtype
    assert jnp.max(jnp.abs(y - ref)) < 2e-6

    # Ragged (not a multiple of 128) shape exercises the bulk + tail path.
    x2 = jax.random.normal(jax.random.PRNGKey(1), (3, 5, 7, 11), dtype=jnp.float32)
    y2 = jax.block_until_ready(my_sigmoid(x2))
    assert y2.shape == x2.shape
    assert jnp.max(jnp.abs(y2 - jax.nn.sigmoid(x2))) < 2e-6

    # bf16 path: narrow dtype kept end-to-end, f32 math in-register.
    x3 = jax.random.normal(jax.random.PRNGKey(2), (2, 4, 16, 16), dtype=jnp.bfloat16)
    y3 = jax.block_until_ready(my_sigmoid(x3))
    assert y3.dtype == jnp.bfloat16
    assert jnp.max(jnp.abs(y3.astype(jnp.float32)
                           - jax.nn.sigmoid(x3.astype(jnp.float32)))) < 1e-2

    print("KERNEL_OK")
</pallas_src>

<mosaic_0001>
module attributes {stable_mosaic.version = 11 : i64} {
  func.func @_sigmoid_kernel(%arg0: i32, %arg1: memref<4x512xf32, #tpu.memory_space<vmem>>, %arg2: memref<4x512xf32, #tpu.memory_space<vmem>>) attributes {dimension_semantics = [#tpu.dimension_semantics<parallel>], iteration_bounds = array<i64: 1>, scalar_prefetch = 0 : i64, scratch_operands = 0 : i64, tpu.core_type = #tpu.core_type<tc>, window_params = [{transform_indices = @transform_0, window_bounds = array<i64: 4, 512>}, {transform_indices = @transform_1, window_bounds = array<i64: 4, 512>}]} {
    %c0 = arith.constant 0 : index
    %c0_0 = arith.constant 0 : index
    %0 = vector.load %arg1[%c0, %c0_0] : memref<4x512xf32, #tpu.memory_space<vmem>>, vector<4x512xf32>
    %cst = arith.constant 5.000000e-01 : f32
    %1 = vector.broadcast %cst : f32 to vector<4x512xf32>
    %2 = arith.mulf %1, %0 : vector<4x512xf32>
    %3 = math.tanh %2 : vector<4x512xf32>
    %cst_1 = arith.constant 5.000000e-01 : f32
    %4 = vector.broadcast %cst_1 : f32 to vector<4x512xf32>
    %5 = arith.mulf %4, %3 : vector<4x512xf32>
    %cst_2 = arith.constant 5.000000e-01 : f32
    %6 = vector.broadcast %cst_2 : f32 to vector<4x512xf32>
    %7 = arith.addf %5, %6 : vector<4x512xf32>
    %c0_3 = arith.constant 0 : index
    %c0_4 = arith.constant 0 : index
    %8 = vector.load %arg2[%c0_3, %c0_4] : memref<4x512xf32, #tpu.memory_space<vmem>>, vector<4x512xf32>
    tpu.vector_store %arg2[%c0_3, %c0_4], %7 {strides = array<i32>} : memref<4x512xf32, #tpu.memory_space<vmem>>, vector<4x512xf32>,
    return
  }
  func.func @transform_0(%arg0: i32) -> (i32, i32) {
    %c0_i32 = arith.constant 0 : i32
    %c0_i32_0 = arith.constant 0 : i32
    return %arg0, %c0_i32 : i32, i32
  }
  func.func @transform_1(%arg0: i32) -> (i32, i32) {
    %c0_i32 = arith.constant 0 : i32
    %c0_i32_0 = arith.constant 0 : i32
    return %arg0, %c0_i32 : i32, i32
  }
}

</mosaic_0001>

<bundles_post_ra>
// kernel: tpu_custom_call.1
= control target key start
LH: loop header
LB: loop body
LE: loop exit
PB: predicated region body
PF: predicated region fallthrough
CT: control target
= control target key end

     0   :  { %6 = vsyncpa [#allocation3], 0  ;;  %s138_s0 = inlined_call_operand.hbm [shape: f32[4,512], index: 0, kind: input, shape index: {}]   ;;  %s139_s1 = inlined_call_operand.hbm [shape: f32[4,512], index: 1, kind: output, shape index: {}]  }
   0x1   :  { %7 = vsyncpa [#allocation4], 0  ;;  %s102_s6 = smov [#allocation2]   ;;  %s54_s10 = scalar_lea.hbm %s138_s0, 256 }
   0x2   :  { %s14_s7 = sshll.u32 %s102_s6, 4  ;;  %p55_p0 = scmp.ne.s32.totalorder %s138_s0, %s54_s10  ;;  %s15_s7 = int_to_ptr.vmem [resolvable:$true] %s14_s7 }
   0x3   :  { %p58_p1 = scmp.lt.u32.totalorder %s54_s10, %s138_s0 }
   0x5   :  { %p60_p2 = pnand %p58_p1, %p55_p0 }
   0x7   :  { %63 = shalt.err (!%p60_p2)
}
   0x8   :  { %s64_s15 = scalar_lea.vmem %s15_s7, 256  ;;  %p69_p4 = scmp.lt.s32.totalorder %s15_s7, %s15_s7 }
   0x9   :  { %p65_p3 = scmp.ne.s32.totalorder %s15_s7, %s64_s15  ;;  %p70_p5 = scmp.lt.s32.totalorder %s64_s15, %s64_s15 }
   0xb   :  { %p71_p6 = por %p70_p5, %p69_p4 }
   0xd   :  { %p72_p7 = pnand %p71_p6, %p65_p3 }
   0xf   :  { %75 = shalt.err (!%p72_p7)
}
  0x10   :  { %17 = dma.hbm_to_vmem [thread:$0]  %s138_s0, 256, %s15_s7, [#allocation3]  }
  0x11   :  { %98 = dma.done.wait [#allocation3], 256  }
  0x12   :  { %99 = vsyncadd [#allocation3], 4294967040  ;;  %v21_v0 = vld [vmem:[#allocation2] sm:$0xff]  ;;  %v22_v1 = vld [vmem:[#allocation2 + $0x8] sm:$0xff]  ;;  %s103_s18 = smov [#allocation5]  }
  0x13   :  { %v23_v2 = vmul.f32 0.5, %v21_v0  ;;  %v24_v3 = vmul.f32 0.5, %v22_v1  ;;  %s39_s19 = sshll.u32 %s103_s18, 4  ;;  %s40_s19 = int_to_ptr.vmem [resolvable:$true] %s39_s19 }
  0x14   :  { %s76_s0 = scalar_lea.vmem %s40_s19, 256  ;;  %p81_p9 = scmp.lt.s32.totalorder %s40_s19, %s40_s19 }
  0x15   :  { %50 = vtanh.f32 %v23_v2  ;;  %p77_p8 = scmp.ne.s32.totalorder %s40_s19, %s76_s0  ;;  %p82_p10 = scmp.lt.s32.totalorder %s76_s0, %s76_s0 }
  0x16   :  { %52 = vtanh.f32 %v24_v3 }
  0x17   :  { %p83_p11 = por %p82_p10, %p81_p9 }
  0x19   :  { %p84_p12 = pnand %p83_p11, %p77_p8 }
  0x1f   :  { %v51_v4 = vpop.eup %50 }
  0x20   :  { %v53_v5 = vpop.eup %52  ;;  %v27_v6 = vmul.f32 0.5, %v51_v4 }
  0x21   :  { %v28_v7 = vmul.f32 0.5, %v53_v5 }
  0x22   :  { %v29_v8 = vadd.f32 0.5, %v27_v6 }
  0x23   :  { %v30_v9 = vadd.f32 0.5, %v28_v7 }
  0x24   :  { %31 = vst [vmem:[#allocation5] sm:$0xff] %v29_v8 }
  0x25   :  { %32 = vst [vmem:[#allocation5 + $0x8] sm:$0xff] %v30_v9 }
  0x26   :  { %87 = shalt.err (!%p84_p12)
}
  0x27   :  { %s88_s22 = scalar_lea.hbm %s139_s1, 256 }
  0x28   :  { %p89_p13 = scmp.ne.s32.totalorder %s139_s1, %s88_s22  ;;  %p92_p0 = scmp.lt.u32.totalorder %s88_s22, %s139_s1 }
  0x2a   :  { %p94_p1 = pnand %p92_p0, %p89_p13 }
  0x2c   :  { %97 = shalt.err (!%p94_p1)
}
  0x2d   :  { %42 = dma.vmem_to_hbm [thread:$0]  %s40_s19, 256, %s139_s1, [#allocation4]  }
  0x2e   :  { %100 = dma.done.wait [#allocation4], 256  }
  0x2f   :  { %101 = vsyncadd [#allocation4], 4294967040 }
  0x30   :  { %46 = vsyncpa [#allocation3], 1 }
  0x31   :  { %47 = vsyncpa [#allocation4], 1 }

</bundles_post_ra>
